<compile_context>
chip_gen: v6e
topology: v6e:2x2x1
jax: 0.10.0
libtpu: 0.0.40
codegen_flags: <defaults>
</compile_context>

<pallas_src>
import functools

import numpy as np
import jax
import jax.numpy as jnp
from jax.experimental import pallas as pl
from jax.experimental.pallas import tpu as pltpu


# ----------------------------------------------------------------------------
# Filter rotation: faithful replica of rotate_filter() from the PyTorch code
# (F.affine_grid + F.grid_sample, bilinear, align_corners=False, zero pad).
# ----------------------------------------------------------------------------
def rotate_filters_all(weight, num_rotations):
    """weight: (OC, IC, K, K) float32 -> (R, OC, IC, K, K) float32."""
    OC, IC, K, _ = weight.shape
    # affine_grid base coords, align_corners=False: (2*i + 1)/K - 1
    coords = (2.0 * jnp.arange(K, dtype=jnp.float32) + 1.0) / K - 1.0
    gy, gx = jnp.meshgrid(coords, coords, indexing="ij")  # gy: height, gx: width

    def sample(yy, xx):
        valid = ((yy >= 0) & (yy < K) & (xx >= 0) & (xx < K)).astype(weight.dtype)
        yyc = jnp.clip(yy, 0, K - 1)
        xxc = jnp.clip(xx, 0, K - 1)
        vals = weight[:, :, yyc, xxc]              # (OC, IC, K, K)
        return vals * valid[None, None, :, :]

    rotated = []
    for i in range(num_rotations):
        angle = 2.0 * np.pi * i / num_rotations
        c, s = float(np.cos(angle)), float(np.sin(angle))
        # theta @ [x, y, 1]  with theta = [[c, -s, 0], [s, c, 0]]
        ox = c * gx - s * gy
        oy = s * gx + c * gy
        # grid_sample unnormalize, align_corners=False
        ix = ((ox + 1.0) * K - 1.0) / 2.0
        iy = ((oy + 1.0) * K - 1.0) / 2.0
        x0 = jnp.floor(ix)
        y0 = jnp.floor(iy)
        x0i = x0.astype(jnp.int32)
        y0i = y0.astype(jnp.int32)
        x1i = x0i + 1
        y1i = y0i + 1
        wx1 = ix - x0
        wx0 = 1.0 - wx1
        wy1 = iy - y0
        wy0 = 1.0 - wy1
        out = ((wy0 * wx0)[None, None] * sample(y0i, x0i)
               + (wy0 * wx1)[None, None] * sample(y0i, x1i)
               + (wy1 * wx0)[None, None] * sample(y1i, x0i)
               + (wy1 * wx1)[None, None] * sample(y1i, x1i))
        rotated.append(out)
    return jnp.stack(rotated, axis=0)


# ----------------------------------------------------------------------------
# Pallas kernel: one lane-dense matmul per M-tile.
#   w_ref : (OC, K*K*IC)      bf16   (rotation-averaged filter, constant block)
#   x_ref : (K*K*IC, TM)      bf16   (transposed im2col tile)
#   o_ref : (OC, TM)          f32    (lane-dense: last dim = TM, multiple of 128)
# ----------------------------------------------------------------------------
def _rot_conv_kernel(w_ref, x_ref, o_ref):
    o_ref[...] = jnp.dot(
        w_ref[...], x_ref[...], preferred_element_type=jnp.float32
    ).astype(o_ref.dtype)


def _round_up(x, m):
    return ((x + m - 1) // m) * m


@functools.partial(jax.jit, static_argnames=("num_rotations", "tm"))
def rot_equiv_conv2d(x_nchw, weight, num_rotations=8, tm=512):
    """x_nchw: (B, IC, H, W) f32, weight: (OC, IC, K, K) f32 -> (B, OC, H, W)."""
    B, IC, H, W = x_nchw.shape
    OC, _, K, _ = weight.shape
    pad = K // 2
    R = num_rotations
    KKIC = K * K * IC
    M = B * H * W

    # --- parameter setup (glue): rotate filters, average over rotations -----
    # mean over rotations commutes with the conv (linear in the weights), so a
    # single conv with the averaged filter is exact.
    rot_w = rotate_filters_all(weight, R)                 # (R, OC, IC, K, K) f32
    w_mean = jnp.mean(rot_w, axis=0)                      # (OC, IC, K, K)    f32
    w_mat_t = jnp.transpose(w_mean, (0, 2, 3, 1))         # (OC, K, K, IC)
    w_mat_t = w_mat_t.reshape(OC, KKIC).astype(jnp.bfloat16)   # col = (kh, kw, ic)

    # --- transposed im2col (glue, same jit, bf16): (K*K*IC, M) --------------
    x_pad = jnp.pad(x_nchw, ((0, 0), (0, 0), (pad, pad), (pad, pad)))
    x_t = jnp.transpose(x_pad, (1, 0, 2, 3)).astype(jnp.bfloat16)  # (IC,B,Hp,Wp)
    rows = []
    for kh in range(K):
        for kw in range(K):
            sl = x_t[:, :, kh:kh + H, kw:kw + W]          # (IC, B, H, W)
            rows.append(sl.reshape(IC, M))
    x_col_t = jnp.concatenate(rows, axis=0)               # (K*K*IC, M), row=(kh,kw,ic)

    # --- tiling of M (multiple of 128 so the output stays lane-dense) -------
    TM = min(tm, _round_up(M, 128))
    TM = _round_up(TM, 128)
    M_pad = _round_up(M, TM)
    if M_pad != M:
        x_col_t = jnp.pad(x_col_t, ((0, 0), (0, M_pad - M)))
    grid_m = M_pad // TM

    # VMEM budget (double-buffered): 2*(KKIC*TM*2B) + 2*(OC*TM*4B) + weights,
    # i.e. well under 1 MiB/tile at TM<=2048 -> fits v7x's 64 MiB with margin.
    out_t = pl.pallas_call(
        _rot_conv_kernel,
        out_shape=jax.ShapeDtypeStruct((OC, M_pad), jnp.float32),
        grid_spec=pltpu.PrefetchScalarGridSpec(
            num_scalar_prefetch=0,
            grid=(grid_m,),
            in_specs=[
                pl.BlockSpec((OC, KKIC), lambda i: (0, 0)),   # tiny, stays resident
                pl.BlockSpec((KKIC, TM), lambda i: (0, i)),
            ],
            out_specs=pl.BlockSpec((OC, TM), lambda i: (0, i)),
        ),
        compiler_params=pltpu.CompilerParams(
            dimension_semantics=("parallel",),        # shard row tiles across TCs (v7x)
            vmem_limit_bytes=32 * 1024 * 1024,
        ),
    )(w_mat_t, x_col_t)

    out_t = out_t[:, :M]                                  # (OC, B*H*W)
    out = out_t.reshape(OC, B, H, W)
    return jnp.transpose(out, (1, 0, 2, 3))               # (B, OC, H, W)


# ----------------------------------------------------------------------------
# Pure-JAX reference (same semantics as the PyTorch forward) for validation.
# ----------------------------------------------------------------------------
def reference_forward(x_nchw, weight, num_rotations=8):
    K = weight.shape[-1]
    pad = K // 2
    rot_w = rotate_filters_all(weight, num_rotations)
    outs = []
    for r in range(num_rotations):
        o = jax.lax.conv_general_dilated(
            x_nchw, rot_w[r], window_strides=(1, 1),
            padding=[(pad, pad), (pad, pad)],
            dimension_numbers=("NCHW", "OIHW", "NCHW"))
        outs.append(o)
    return jnp.mean(jnp.stack(outs, axis=1), axis=1)


if __name__ == "__main__":
    B, IC, H, W = 2, 4, 16, 16
    OC, K, R = 8, 3, 8

    key = jax.random.PRNGKey(0)
    kx, kw = jax.random.split(key)
    x = jax.random.normal(kx, (B, IC, H, W), dtype=jnp.float32)
    # Deterministic init mimicking nn.Conv2d default (kaiming-uniform bound).
    bound = 1.0 / np.sqrt(IC * K * K)
    weight = jax.random.uniform(kw, (OC, IC, K, K), dtype=jnp.float32,
                                minval=-bound, maxval=bound)

    # tm=128 so the toy shape (M = 512 rows) exercises a 4-step pipelined grid;
    # the default tm=512 is the production tile size.
    out = rot_equiv_conv2d(x, weight, num_rotations=R, tm=128)
    out = jax.block_until_ready(out)

    ref = reference_forward(x, weight, num_rotations=R)
    assert out.shape == (B, OC, H, W)
    max_err = float(jnp.max(jnp.abs(out - ref)))
    # bf16 MXU inputs (f32 accumulation) -> loose-ish tolerance vs f32 reference.
    assert max_err < 5e-2, f"mismatch vs reference: max abs err {max_err}"

    print("KERNEL_OK")
</pallas_src>

<mosaic_0001>
module attributes {stable_mosaic.version = 11 : i64} {
  func.func @_rot_conv_kernel(%arg0: i32, %arg1: memref<8x36xbf16, #tpu.memory_space<vmem>>, %arg2: memref<36x128xbf16, #tpu.memory_space<vmem>>, %arg3: memref<8x128xf32, #tpu.memory_space<vmem>>) attributes {dimension_semantics = [#tpu.dimension_semantics<parallel>], iteration_bounds = array<i64: 4>, scalar_prefetch = 0 : i64, scratch_operands = 0 : i64, tpu.core_type = #tpu.core_type<tc>, window_params = [{pipeline_mode = #tpu.pipeline_mode<synchronous>, transform_indices = @transform_0, window_bounds = array<i64: 8, 36>}, {transform_indices = @transform_1, window_bounds = array<i64: 36, 128>}, {transform_indices = @transform_2, window_bounds = array<i64: 8, 128>}]} {
    %c0 = arith.constant 0 : index
    %c0_0 = arith.constant 0 : index
    %0 = vector.load %arg1[%c0, %c0_0] : memref<8x36xbf16, #tpu.memory_space<vmem>>, vector<8x36xbf16>
    %c0_1 = arith.constant 0 : index
    %c0_2 = arith.constant 0 : index
    %1 = vector.load %arg2[%c0_1, %c0_2] : memref<36x128xbf16, #tpu.memory_space<vmem>>, vector<36x128xbf16>
    %cst = arith.constant dense<0.000000e+00> : vector<8x128xf32>
    %2 = tpu.matmul %0, %1, %cst {dimension_numbers = #tpu.dot_dimension_numbers<[1], [0], [0], [1], [0, 0, 1, 1], [], []>} : vector<8x36xbf16>, vector<36x128xbf16>, vector<8x128xf32> -> vector<8x128xf32>
    %c0_3 = arith.constant 0 : index
    %c0_4 = arith.constant 0 : index
    %3 = vector.load %arg3[%c0_3, %c0_4] : memref<8x128xf32, #tpu.memory_space<vmem>>, vector<8x128xf32>
    tpu.vector_store %arg3[%c0_3, %c0_4], %2 {strides = array<i32>} : memref<8x128xf32, #tpu.memory_space<vmem>>, vector<8x128xf32>,
    return
  }
  func.func @transform_0(%arg0: i32) -> (i32, i32) {
    %c0_i32 = arith.constant 0 : i32
    %c0_i32_0 = arith.constant 0 : i32
    %c0_i32_1 = arith.constant 0 : i32
    return %c0_i32, %c0_i32_0 : i32, i32
  }
  func.func @transform_1(%arg0: i32) -> (i32, i32) {
    %c0_i32 = arith.constant 0 : i32
    %c0_i32_0 = arith.constant 0 : i32
    return %c0_i32, %arg0 : i32, i32
  }
  func.func @transform_2(%arg0: i32) -> (i32, i32) {
    %c0_i32 = arith.constant 0 : i32
    %c0_i32_0 = arith.constant 0 : i32
    return %c0_i32, %arg0 : i32, i32
  }
}

</mosaic_0001>

<bundles_post_ra>
// kernel: rot_equiv_conv2d.1
= control target key start
LH: loop header
LB: loop body
LE: loop exit
PB: predicated region body
PF: predicated region fallthrough
CT: control target
= control target key end

     0   :  { %s430_s9 = smov 0   ;;  %s432_s10 = smov 0   ;;  %s487_s0 = inlined_call_operand.vmem [shape: bf16[8,36], index: 0, kind: input, shape index: {}]   ;;  %s488_s1 = inlined_call_operand.vmem [shape: bf16[36,512], index: 1, kind: input, shape index: {}]   ;;  %s489_s2 = inlined_call_operand.vmem [shape: f32[8,512], index: 2, kind: output, shape index: {}]  }
   0x1   :  { %s434_s11 = smov 0  }
   0x2 LB: > { %s331_s12 = sadd.s32 4294967295, %s411_s11   ;;  %s447_s13 = sadd.s32 1, %s411_s11   ;;  %s411_s11 = sphi %s434_s11, %s492_s11   ;;  %s407_s10 = sphi %s432_s10, %s491_s10   ;;  %s403_s9 = sphi %s430_s9, %s490_s9  }
   0x3   : > { %s37_s14 = ssub.s32 %s411_s11, %s447_s13  ;;  %s40_s15 = sadd.s32 1, %s407_s10 }
   0x4   : > { %p38_p0 = scmp.eq.s32.totalorder %s37_s14, 0  ;;  %p47_p1 = scmp.ne.s32.totalorder %s407_s10, %s403_s9 }
   0x5   : > { %p48_p2 = scmp.eq.s32.totalorder %s411_s11, 0  ;;  %p334_p4 = scmp.ge.s32.totalorder %s411_s11, 4 }
   0x6   : > { %s456_s16 = scalar_select %p38_p0, %s407_s10, %s40_s15  }
   0x7   : > { %p49_p3 = por %p48_p2, %p47_p1  ;;  %102 = sbr.rel (%p334_p4) target bundleno = 19 (0x13), region = 20 }
   0xc   : > { %105 = sbr.rel (!%p49_p3) target bundleno = 19 (0x13), region = 24  ;;  %s107_s17 = sand.u32 (%p49_p3), 1, %s407_s10  }
   0xd   : > { %s335_s18 = sshll.u32 (%p49_p3), %s411_s11, 2  ;;  %s358_s19 = smul.u32 (%p49_p3), 20, %s107_s17 }
   0xe   : > { %s111_s22 = scalar_lea.vmem (%p49_p3), %s488_s1, %s335_s18 }
   0xf   : > { %v128_v0 = vld [vmem:[%s111_s22] sm:$0xf] (%p49_p3)  ;;  %v130_v1 = vld [vmem:[%s111_s22 + $0x10] sm:$0xf] (%p49_p3)  ;;  %s109_s23 = scalar_lea.vmem (%p49_p3), [#allocation2], %s358_s19 }
  0x10   : > { %v132_v2 = vld [vmem:[%s111_s22 + $0x20] sm:$0xf] (%p49_p3)  ;;  %v134_v3 = vld [vmem:[%s111_s22 + $0x30] sm:$0xf] (%p49_p3)  ;;  %129 = vst [vmem:[%s109_s23] sm:$0xf] (%p49_p3), %v128_v0 }
  0x11   : > { %v136_v4 = vld [vmem:[%s111_s22 + $0x40] sm:$0xf]  ;;  %131 = vst [vmem:[%s109_s23 + $0x4] sm:$0xf] %v130_v1  ;;  %133 = vst [vmem:[%s109_s23 + $0x8] sm:$0xf] %v132_v2 }
  0x12   : > { %135 = vst [vmem:[%s109_s23 + $0xc] sm:$0xf] %v134_v3  ;;  %137 = vst [vmem:[%s109_s23 + $0x10] sm:$0xf] %v136_v4 }
  0x13 PF: > { %p336_p5 = scmp.ge.s32.totalorder %s411_s11, 1  ;;  %p170_p6 = scmp.lt.s32.totalorder %s411_s11, 5 }
  0x15   : > { %p171_p7 = pnand %p336_p5, %p170_p6 }
  0x16   : > { %s177_s24 = sand.u32 (!%p171_p7), 1, %s403_s9   ;;  %p197_p8 = scmp.lt.s32.totalorder (!%p171_p7), %s331_s12, 3 }
  0x17   : > { %174 = sbr.rel (%p171_p7) target bundleno = 240 (0xf0), region = 65 }
  0x18   : > { %s359_s25 = smul.u32 (!%p171_p7), 20, %s177_s24 }
  0x1a   : > { %s179_s26 = scalar_lea.vmem (!%p171_p7), [#allocation2], %s359_s25 }
  0x1c   : > { %v413_v5 = vmov 0.0   ;;  %vm414_vm0 = vmmov 0   ;;  %vm227_vm1 = vcmask 1041408   ;;  %v386_v6 = vld [vmem:[%s179_s26 + $0x10] ss:$0 sps:$4 sm:$0x33]  }
  0x1d   : > { %348 = vmatprep.subr.bf16.mxu0 %v413_v5  ;;  %354 = vmatprep.mubr.msk.bf16.mxu0 %vm414_vm0, %v413_v5  ;;  %v229_v7 = vsel %vm227_vm1, %v386_v6, 0  ;;  %v387_v8 = vld [vmem:[%s179_s26 + $0x8] sm:$0xff]   ;;  %v388_v9 = vld [vmem:[%s179_s26] sm:$0xff]   ;;  %vm223_vm2 = vcmask 293888   ;;  %s494_s12 = smov (!%p197_p8, %s331_s12), 3 }
  0x1e   : > { %349 = vmatpush3.bf16.msra.mxu0 %v229_v7  ;;  %v202_v10 = vld [vmem:[%s487_s0] sm:$0xf]  ;;  %s337_s29 = sshll.u32 %s494_s12, 3 }
  0x1f   : > { %350 = vmatprep.subr.bf16.mxu0 %v413_v5  ;;  %s200_s4 = scalar_lea.vmem %s489_s2, %s337_s29 }
  0x22   : > { %351 = vmatpush3.bf16.msra.mxu0 %v387_v8 }
  0x23   : > { %352 = vmatprep.subr.bf16.mxu0 %v413_v5 }
  0x26   : > { %353 = vmatpush3.bf16.msra.mxu0 %v388_v9 }
  0x29   : > { %355 = vmatmul.mubr.msk.bf16.vlgmr.msra.gmra.mxu0 %vm223_vm2, %v202_v10 }
  0xe9   : > { %v265_v11 = vpop.f32.mrf.mxu0 }
  0xea   : > { %271 = vst [vmem:[%s200_s4] sm:$0xff] %v265_v11 }
  0xeb   : > { %v356_v12 = vpop.f32.mrf.mxu0 }
  0xed   : > { %v268_v13 = vpop.f32.mrf.mxu0 }
  0xef   : > { %v357_v14 = vpop.f32.mrf.mxu0 }
  0xf0 PF: > { %p9_p9 = scmp.ge.s32.totalorder %s447_s13, 6   ;;  %s490_s9 = smov %s407_s10 }
  0xf1   : > { %s491_s10 = smov %s456_s16  ;;  %s492_s11 = smov %s447_s13 }
  0xf2   :  { %11 = sbr.rel (!%p9_p9) target bundleno = 2 (0x2), region = 104 }

</bundles_post_ra>
